<compile_context>
chip_gen: v7x
topology: tpu7x:2x2x1
jax: 0.10.0
libtpu: 0.0.40
codegen_flags: <defaults>
</compile_context>

<pallas_src>
import functools

import jax
import jax.numpy as jnp
from jax.experimental import pallas as pl
from jax.experimental.pallas import tpu as pltpu


def _round_up(x, m):
    return ((x + m - 1) // m) * m


def _tpu_generation():
    try:
        kind = jax.devices()[0].device_kind.lower()
    except Exception:
        return "unknown"
    if "v7" in kind:
        return "v7x"
    if "v6" in kind:
        return "v6e"
    if "v5" in kind:
        return "v5e"
    return "unknown"


# (tm_target, th_target, vmem_limit_bytes) per generation.
_GEN_CONFIG = {
    "v5e":     (384, 512, 64 << 20),   # 128 MiB physical, crossover ~240 tokens
    "v6e":     (768, 512, 96 << 20),   # 128 MiB physical, crossover ~650 tokens
    "v7x":     (448, 256, 40 << 20),   # 64 MiB physical/TC, crossover ~320/TC
    "unknown": (256, 512, 48 << 20),
}

# Packed-weight size below which we keep all weights resident in VMEM (th = H).
_WEIGHT_RESIDENT_BUDGET = 20 << 20


def _pick_hidden_tile(H, th_target):
    """Largest multiple of 128 that divides H and is <= th_target."""
    if H <= th_target:
        return H
    th = (th_target // 128) * 128
    while th > 128 and H % th != 0:
        th -= 128
    return th if (th >= 128 and H % th == 0) else H


def _vmem_usage_bytes(tm, th, C, n_h, in_itemsize, out_itemsize):
    use = 0
    use += 2 * tm * C * in_itemsize          # x tile (double-buffered)
    use += 2 * C * (2 * th) * in_itemsize    # [Wg|Wu] tile
    use += 2 * (2 * th) * 4                  # [bg|bu] (f32)
    use += 2 * th * C * in_itemsize          # Wd tile
    use += 2 * C * 4                         # bd (f32)
    use += 2 * tm * C * out_itemsize         # out tile
    if n_h > 1:
        use += tm * C * 4                    # f32 accumulator scratch
    use += tm * (2 * th) * 4 + tm * th * 4   # gu / act f32 intermediates
    return use


# ---------------------------------------------------------------------------
# Kernels
# ---------------------------------------------------------------------------

def _glu_ffn_resident_kernel(x_ref, wgu_ref, bgu_ref, wd_ref, bd_ref, o_ref, *, th):
    """n_h == 1: weights resident across all M tiles, direct write to o_ref."""
    x = x_ref[...]                                                     # (tm, C)
    gu = jnp.dot(x, wgu_ref[...], preferred_element_type=jnp.float32) + bgu_ref[...]
    gate = gu[:, :th]
    up = gu[:, th:]
    act = gate * jax.nn.sigmoid(gate) * up                             # SiLU * up, f32
    o_ref[...] = (jnp.dot(act.astype(wd_ref.dtype), wd_ref[...],
                          preferred_element_type=jnp.float32)
                  + bd_ref[...]).astype(o_ref.dtype)


def _glu_ffn_kernel(x_ref, wgu_ref, bgu_ref, wd_ref, bd_ref, o_ref, acc_ref, *, th):
    """n_h > 1: hidden dim tiled (reduction axis last), f32 VMEM accumulator."""
    h_idx = pl.program_id(1)

    @pl.when(h_idx == 0)
    def _():
        acc_ref[...] = jnp.zeros_like(acc_ref)

    x = x_ref[...]                                                     # (tm, C)
    gu = jnp.dot(x, wgu_ref[...], preferred_element_type=jnp.float32) + bgu_ref[...]
    gate = gu[:, :th]
    up = gu[:, th:]
    act = gate * jax.nn.sigmoid(gate) * up
    acc_ref[...] += jnp.dot(act.astype(wd_ref.dtype), wd_ref[...],
                            preferred_element_type=jnp.float32)

    @pl.when(h_idx == pl.num_programs(1) - 1)
    def _():
        o_ref[...] = (acc_ref[...] + bd_ref[...]).astype(o_ref.dtype)


# ---------------------------------------------------------------------------
# One-time weight packing (call once, reuse across every forward call)
# ---------------------------------------------------------------------------

def pack_glu_ffn_params(wg, bg, wu, bu, wd, bd, *, compute_dtype=jnp.bfloat16, th=None):
    """Pack gate|up weights per-H-tile and cast everything once.

    wg, wu: (C, H); wd: (H, C); biases 1-D.  Returns a dict reused across calls.
    """
    C, H = wg.shape
    assert wu.shape == (C, H) and wd.shape == (H, C)
    assert C % 128 == 0 and H % 128 == 0, "feature dims must be lane-aligned"
    compute_dtype = jnp.dtype(compute_dtype)

    if th is None:
        weight_bytes = 3 * C * H * compute_dtype.itemsize + (2 * H + C) * 4
        if weight_bytes <= _WEIGHT_RESIDENT_BUDGET:
            th = H                                   # resident-weight fast path
        else:
            _, th_target, _ = _GEN_CONFIG[_tpu_generation()]
            th = _pick_hidden_tile(H, th_target)
    assert H % th == 0 and th % 128 == 0
    n_h = H // th

    # H-tile h of the packed matrix is [Wg[:, h*th:(h+1)*th] | Wu[:, same]].
    wgu = jnp.concatenate(
        [wg.reshape(C, n_h, th), wu.reshape(C, n_h, th)], axis=-1
    ).reshape(C, n_h * 2 * th)
    bgu = jnp.concatenate(
        [bg.reshape(n_h, th), bu.reshape(n_h, th)], axis=-1
    ).reshape(1, n_h * 2 * th).astype(jnp.float32)

    return {
        "wgu": wgu.astype(compute_dtype),
        "bgu": bgu,
        "wd": wd.astype(compute_dtype),
        "bd": bd.reshape(1, C).astype(jnp.float32),
        "th": th,
        "C": C,
        "H": H,
        "compute_dtype": compute_dtype,
    }


# ---------------------------------------------------------------------------
# Forward pass
# ---------------------------------------------------------------------------

def glu_feedforward(x, params, *, out_dtype=None, tm=None):
    """x: (B, T, C); params from pack_glu_ffn_params.  Returns (B, T, C)."""
    B, T, C = x.shape
    assert C == params["C"]
    H, th = params["H"], params["th"]
    n_h = H // th
    compute_dtype = params["compute_dtype"]
    out_dtype = jnp.dtype(x.dtype if out_dtype is None else out_dtype)
    M = B * T

    gen = _tpu_generation()
    tm_target, _, vmem_limit = _GEN_CONFIG[gen]
    if tm is None:
        tm = tm_target
    tm = max(16, min(tm, _round_up(M, 16)))
    tm = _round_up(tm, 16)                   # bf16 packs 16 rows per vreg

    # Shrink tm if the double-buffered tiles would overflow the VMEM budget.
    budget = int(0.85 * vmem_limit)
    while tm > 16 and _vmem_usage_bytes(tm, th, C, n_h,
                                        compute_dtype.itemsize,
                                        out_dtype.itemsize) > budget:
        tm = max(16, _round_up(tm // 2, 16))

    M_pad = _round_up(M, tm)
    x2d = x.reshape(M, C)
    if x2d.dtype != compute_dtype:
        # TODO(synk): feed bf16 activations from upstream to skip this HBM pass.
        x2d = x2d.astype(compute_dtype)
    if M_pad != M:
        x2d = jnp.pad(x2d, ((0, M_pad - M), (0, 0)))

    if n_h == 1:
        kernel = functools.partial(_glu_ffn_resident_kernel, th=th)
        grid = (M_pad // tm,)
        in_specs = [
            pl.BlockSpec((tm, C), lambda i: (i, 0)),        # x tile
            pl.BlockSpec((C, 2 * th), lambda i: (0, 0)),    # [Wg|Wu] (resident)
            pl.BlockSpec((1, 2 * th), lambda i: (0, 0)),    # [bg|bu]
            pl.BlockSpec((th, C), lambda i: (0, 0)),        # Wd (resident)
            pl.BlockSpec((1, C), lambda i: (0, 0)),         # bd
        ]
        out_specs = pl.BlockSpec((tm, C), lambda i: (i, 0))
        scratch_shapes = ()
        dim_sem = ("parallel",)
    else:
        kernel = functools.partial(_glu_ffn_kernel, th=th)
        grid = (M_pad // tm, n_h)                            # reduction axis last
        in_specs = [
            pl.BlockSpec((tm, C), lambda i, h: (i, 0)),      # x tile
            pl.BlockSpec((C, 2 * th), lambda i, h: (0, h)),  # [Wg|Wu] H-tile
            pl.BlockSpec((1, 2 * th), lambda i, h: (0, h)),  # [bg|bu] H-tile
            pl.BlockSpec((th, C), lambda i, h: (h, 0)),      # Wd H-tile
            pl.BlockSpec((1, C), lambda i, h: (0, 0)),       # bd
        ]
        out_specs = pl.BlockSpec((tm, C), lambda i, h: (i, 0))
        scratch_shapes = (pltpu.VMEM((tm, C), jnp.float32),)
        dim_sem = ("parallel", "arbitrary")

    out2d = pl.pallas_call(
        kernel,
        out_shape=jax.ShapeDtypeStruct((M_pad, C), out_dtype),
        grid_spec=pltpu.PrefetchScalarGridSpec(
            num_scalar_prefetch=0,
            grid=grid,
            in_specs=in_specs,
            out_specs=out_specs,
            scratch_shapes=scratch_shapes,
        ),
        compiler_params=pltpu.CompilerParams(
            dimension_semantics=dim_sem,
            vmem_limit_bytes=vmem_limit,
        ),
    )(x2d, params["wgu"], params["bgu"], params["wd"], params["bd"])

    if M_pad != M:
        out2d = out2d[:M]
    return out2d.reshape(B, T, C)


def _reference(x, wg, bg, wu, bu, wd, bd):
    gate = x @ wg + bg
    up = x @ wu + bu
    h = jax.nn.silu(gate) * up
    return h @ wd + bd


if __name__ == "__main__":
    n_embd = 128
    hidden = 4 * n_embd
    B, T = 2, 8

    key = jax.random.PRNGKey(0)
    kx, kg, kbg, ku, kbu, kd, kbd = jax.random.split(key, 7)

    x = jax.random.normal(kx, (B, T, n_embd), dtype=jnp.float32)
    # Parameters mirror nn.Linear shapes but stored transposed: (in, out).
    wg = jax.random.normal(kg, (n_embd, hidden), dtype=jnp.float32) * 0.02
    bg = jax.random.normal(kbg, (hidden,), dtype=jnp.float32) * 0.02
    wu = jax.random.normal(ku, (n_embd, hidden), dtype=jnp.float32) * 0.02
    bu = jax.random.normal(kbu, (hidden,), dtype=jnp.float32) * 0.02
    wd = jax.random.normal(kd, (hidden, n_embd), dtype=jnp.float32) * 0.02
    bd = jax.random.normal(kbd, (n_embd,), dtype=jnp.float32) * 0.02

    # Pack + cast weights ONCE (reused across every subsequent call).
    params = pack_glu_ffn_params(wg, bg, wu, bu, wd, bd)
    params = jax.tree_util.tree_map(
        lambda a: jax.block_until_ready(a) if isinstance(a, jax.Array) else a, params)

    out = glu_feedforward(x, params)
    out = jax.block_until_ready(out)

    ref = _reference(x, wg, bg, wu, bu, wd, bd)
    assert out.shape == (B, T, n_embd)
    # bf16 matmul operands (f32 accumulate) -> loosened tolerance vs f32 reference.
    assert jnp.allclose(out, ref, atol=2e-2, rtol=2e-2), "mismatch vs reference"

    print("KERNEL_OK")
</pallas_src>

<mosaic_0001>
module attributes {stable_mosaic.version = 11 : i64} {
  func.func @_glu_ffn_resident_kernel(%arg0: i32, %arg1: memref<16x128xbf16, #tpu.memory_space<vmem>>, %arg2: memref<128x1024xbf16, #tpu.memory_space<vmem>>, %arg3: memref<1x1024xf32, #tpu.memory_space<vmem>>, %arg4: memref<512x128xbf16, #tpu.memory_space<vmem>>, %arg5: memref<1x128xf32, #tpu.memory_space<vmem>>, %arg6: memref<16x128xf32, #tpu.memory_space<vmem>>) attributes {dimension_semantics = [#tpu.dimension_semantics<parallel>], iteration_bounds = array<i64: 1>, scalar_prefetch = 0 : i64, scratch_operands = 0 : i64, tpu.core_type = #tpu.core_type<tc>, window_params = [{transform_indices = @transform_0, window_bounds = array<i64: 16, 128>}, {pipeline_mode = #tpu.pipeline_mode<synchronous>, transform_indices = @transform_1, window_bounds = array<i64: 128, 1024>}, {pipeline_mode = #tpu.pipeline_mode<synchronous>, transform_indices = @transform_2, window_bounds = array<i64: 1, 1024>}, {pipeline_mode = #tpu.pipeline_mode<synchronous>, transform_indices = @transform_3, window_bounds = array<i64: 512, 128>}, {pipeline_mode = #tpu.pipeline_mode<synchronous>, transform_indices = @transform_4, window_bounds = array<i64: 1, 128>}, {transform_indices = @transform_5, window_bounds = array<i64: 16, 128>}]} {
    %c0 = arith.constant 0 : index
    %c0_0 = arith.constant 0 : index
    %0 = vector.load %arg1[%c0, %c0_0] : memref<16x128xbf16, #tpu.memory_space<vmem>>, vector<16x128xbf16>
    %c0_1 = arith.constant 0 : index
    %c0_2 = arith.constant 0 : index
    %1 = vector.load %arg2[%c0_1, %c0_2] : memref<128x1024xbf16, #tpu.memory_space<vmem>>, vector<128x1024xbf16>
    %cst = arith.constant dense<0.000000e+00> : vector<16x1024xf32>
    %2 = tpu.matmul %0, %1, %cst {dimension_numbers = #tpu.dot_dimension_numbers<[1], [0], [0], [1], [0, 0, 1, 1], [], []>} : vector<16x128xbf16>, vector<128x1024xbf16>, vector<16x1024xf32> -> vector<16x1024xf32>
    %c0_3 = arith.constant 0 : index
    %c0_4 = arith.constant 0 : index
    %3 = vector.load %arg3[%c0_3, %c0_4] : memref<1x1024xf32, #tpu.memory_space<vmem>>, vector<1x1024xf32>
    %4 = vector.broadcast %3 : vector<1x1024xf32> to vector<16x1024xf32>
    %5 = arith.addf %2, %4 : vector<16x1024xf32>
    %6 = vector.extract_strided_slice %5 {offsets = [0, 0], sizes = [16, 512], strides = [1, 1]} : vector<16x1024xf32> to vector<16x512xf32>
    %7 = vector.extract_strided_slice %5 {offsets = [0, 512], sizes = [16, 512], strides = [1, 1]} : vector<16x1024xf32> to vector<16x512xf32>
    %8 = arith.negf %6 : vector<16x512xf32>
    %9 = math.exp %8 : vector<16x512xf32>
    %cst_5 = arith.constant 1.000000e+00 : f32
    %10 = vector.broadcast %cst_5 : f32 to vector<16x512xf32>
    %11 = arith.addf %10, %9 : vector<16x512xf32>
    %12 = arith.divf %10, %11 : vector<16x512xf32>
    %13 = arith.mulf %6, %12 : vector<16x512xf32>
    %14 = arith.mulf %13, %7 : vector<16x512xf32>
    %15 = arith.truncf %14 : vector<16x512xf32> to vector<16x512xbf16>
    %c0_6 = arith.constant 0 : index
    %c0_7 = arith.constant 0 : index
    %16 = vector.load %arg4[%c0_6, %c0_7] : memref<512x128xbf16, #tpu.memory_space<vmem>>, vector<512x128xbf16>
    %cst_8 = arith.constant dense<0.000000e+00> : vector<16x128xf32>
    %17 = tpu.matmul %15, %16, %cst_8 {dimension_numbers = #tpu.dot_dimension_numbers<[1], [0], [0], [1], [0, 0, 1, 1], [], []>} : vector<16x512xbf16>, vector<512x128xbf16>, vector<16x128xf32> -> vector<16x128xf32>
    %c0_9 = arith.constant 0 : index
    %c0_10 = arith.constant 0 : index
    %18 = vector.load %arg5[%c0_9, %c0_10] : memref<1x128xf32, #tpu.memory_space<vmem>>, vector<1x128xf32>
    %19 = vector.broadcast %18 : vector<1x128xf32> to vector<16x128xf32>
    %20 = arith.addf %17, %19 : vector<16x128xf32>
    %c0_11 = arith.constant 0 : index
    %c0_12 = arith.constant 0 : index
    %21 = vector.load %arg6[%c0_11, %c0_12] : memref<16x128xf32, #tpu.memory_space<vmem>>, vector<16x128xf32>
    tpu.vector_store %arg6[%c0_11, %c0_12], %20 {strides = array<i32>} : memref<16x128xf32, #tpu.memory_space<vmem>>, vector<16x128xf32>,
    return
  }
  func.func @transform_0(%arg0: i32) -> (i32, i32) {
    %c0_i32 = arith.constant 0 : i32
    %c0_i32_0 = arith.constant 0 : i32
    return %arg0, %c0_i32 : i32, i32
  }
  func.func @transform_1(%arg0: i32) -> (i32, i32) {
    %c0_i32 = arith.constant 0 : i32
    %c0_i32_0 = arith.constant 0 : i32
    %c0_i32_1 = arith.constant 0 : i32
    return %c0_i32, %c0_i32_0 : i32, i32
  }
  func.func @transform_2(%arg0: i32) -> (i32, i32) {
    %c0_i32 = arith.constant 0 : i32
    %c0_i32_0 = arith.constant 0 : i32
    %c0_i32_1 = arith.constant 0 : i32
    return %c0_i32, %c0_i32_0 : i32, i32
  }
  func.func @transform_3(%arg0: i32) -> (i32, i32) {
    %c0_i32 = arith.constant 0 : i32
    %c0_i32_0 = arith.constant 0 : i32
    %c0_i32_1 = arith.constant 0 : i32
    return %c0_i32, %c0_i32_0 : i32, i32
  }
  func.func @transform_4(%arg0: i32) -> (i32, i32) {
    %c0_i32 = arith.constant 0 : i32
    %c0_i32_0 = arith.constant 0 : i32
    %c0_i32_1 = arith.constant 0 : i32
    return %c0_i32, %c0_i32_0 : i32, i32
  }
  func.func @transform_5(%arg0: i32) -> (i32, i32) {
    %c0_i32 = arith.constant 0 : i32
    %c0_i32_0 = arith.constant 0 : i32
    return %arg0, %c0_i32 : i32, i32
  }
}

</mosaic_0001>

<bundles_post_ra>
// kernel: tpu_custom_call.1
= control target key start
LH: loop header
LB: loop body
LE: loop exit
PB: predicated region body
PF: predicated region fallthrough
CT: control target
= control target key end

     0   :  { %10 = vsyncpa [#allocation3], 0  ;;  %s1640_s0 = inlined_call_operand.hbm [shape: bf16[16,128], index: 0, kind: input, shape index: {}]   ;;  %s1641_s1 = inlined_call_operand.hbm [shape: bf16[128,1024], index: 1, kind: input, shape index: {}]   ;;  %s1642_s2 = inlined_call_operand.hbm [shape: f32[1,1024], index: 2, kind: input, shape index: {}]   ;;  %s1643_s3 = inlined_call_operand.hbm [shape: bf16[512,128], index: 3, kind: input, shape index: {}]   ;;  %s1644_s4 = inlined_call_operand.vmem [shape: f32[1,128], index: 4, kind: input, shape index: {}]   ;;  %s1645_s5 = inlined_call_operand.hbm [shape: f32[16,128], index: 5, kind: output, shape index: {}]  }
   0x1   :  { %11 = vsyncpa [#allocation6], 0 }
   0x2   :  { %12 = vsyncpa [#allocation9], 0 }
   0x3   :  { %13 = vsyncpa [#allocation4], 0  ;;  %s1460_s18 = smov [#allocation5]   ;;  %s1342_s22 = scalar_lea.hbm %s1641_s1, 8192 }
   0x4   :  { %s31_s19 = sshll.u32 %s1460_s18, 4  ;;  %p1343_p0 = scmp.ne.s32.totalorder %s1641_s1, %s1342_s22  ;;  %s32_s19 = int_to_ptr.vmem [resolvable:$true] %s31_s19 }
   0x5   :  { %p1346_p1 = scmp.lt.u32.totalorder %s1342_s22, %s1641_s1 }
   0x7   :  { %p1348_p2 = pnand %p1346_p1, %p1343_p0 }
   0x9   :  { %1351 = shalt.err (!%p1348_p2)
}
   0xa   :  { %s1352_s27 = scalar_lea.vmem %s32_s19, 8192  ;;  %p1357_p4 = scmp.lt.s32.totalorder %s32_s19, %s32_s19 }
   0xb   :  { %p1353_p3 = scmp.ne.s32.totalorder %s32_s19, %s1352_s27  ;;  %p1358_p5 = scmp.lt.s32.totalorder %s1352_s27, %s1352_s27 }
   0xd   :  { %p1359_p6 = por %p1358_p5, %p1357_p4 }
   0xf   :  { %p1360_p7 = pnand %p1359_p6, %p1353_p3 }
  0x11   :  { %1363 = shalt.err (!%p1360_p7)
}
  0x12   :  { %s1461_s28 = smov 512   ;;  %s1462_s29 = smov 32  }
  0x13   :  { %37 = dma.hbm_to_vmem [thread:$0]  %s1641_s1, 8192, %s32_s19, [#allocation6], %s1461_s28, %s1461_s28, %s1462_s29  }
  0x14   :  { %s1463_s7 = smov [#allocation2]   ;;  %s1364_s11 = scalar_lea.hbm %s1640_s0, 128 }
  0x15   :  { %s19_s8 = sshll.u32 %s1463_s7, 4  ;;  %p1365_p8 = scmp.ne.s32.totalorder %s1640_s0, %s1364_s11  ;;  %s20_s8 = int_to_ptr.vmem [resolvable:$true] %s19_s8 }
  0x16   :  { %p1368_p9 = scmp.lt.u32.totalorder %s1364_s11, %s1640_s0 }
  0x18   :  { %p1370_p10 = pnand %p1368_p9, %p1365_p8 }
  0x1a   :  { %1373 = shalt.err (!%p1370_p10)
}
  0x1b   :  { %s1374_s16 = scalar_lea.vmem %s20_s8, 128  ;;  %p1379_p12 = scmp.lt.s32.totalorder %s20_s8, %s20_s8 }
  0x1c   :  { %p1375_p11 = scmp.ne.s32.totalorder %s20_s8, %s1374_s16  ;;  %p1380_p13 = scmp.lt.s32.totalorder %s1374_s16, %s1374_s16 }
  0x1e   :  { %p1381_p0 = por %p1380_p13, %p1379_p12 }
  0x20   :  { %p1382_p1 = pnand %p1381_p0, %p1375_p11 }
  0x22   :  { %1385 = shalt.err (!%p1382_p1)
}
  0x23   :  { %s1464_s1 = smov 64   ;;  %s1465_s17 = smov 4  }
  0x24   :  { %25 = dma.hbm_to_vmem [thread:$0]  %s1640_s0, 128, %s20_s8, [#allocation3], %s1464_s1, %s1464_s1, %s1465_s17  }
  0x25   :  { %s1466_s20 = smov [#allocation7]   ;;  %s1467_s22 = smov [#allocation8]  }
  0x26   :  { %s44_s21 = sshll.u32 %s1466_s20, 4  ;;  %s53_s23 = sshll.u32 %s1467_s22, 4  ;;  %s45_s21 = int_to_ptr.vmem [resolvable:$true] %s44_s21  ;;  %s1529_s23 = int_to_ptr.vmem [resolvable:$true] %s53_s23 }
  0x27   :  { %s1386_s26 = scalar_lea.hbm %s1642_s2, 128 }
  0x28   :  { %p1387_p2 = scmp.ne.s32.totalorder %s1642_s2, %s1386_s26  ;;  %p1390_p3 = scmp.lt.u32.totalorder %s1386_s26, %s1642_s2 }
  0x2a   :  { %p1392_p4 = pnand %p1390_p3, %p1387_p2 }
  0x2c   :  { %1395 = shalt.err (!%p1392_p4)
}
  0x2d   :  { %s1396_s0 = scalar_lea.vmem %s45_s21, 128  ;;  %p1401_p6 = scmp.lt.s32.totalorder %s45_s21, %s45_s21 }
  0x2e   :  { %p1397_p5 = scmp.ne.s32.totalorder %s45_s21, %s1396_s0  ;;  %p1402_p7 = scmp.lt.s32.totalorder %s1396_s0, %s1396_s0 }
  0x30   :  { %p1403_p8 = por %p1402_p7, %p1401_p6 }
  0x32   :  { %p1404_p9 = pnand %p1403_p8, %p1397_p5 }
  0x34   :  { %1407 = shalt.err (!%p1404_p9)
}
  0x35   :  { %47 = dma.hbm_to_vmem [thread:$0]  %s1642_s2, 128, %s45_s21, [#allocation6]  }
  0x36   :  { %s1408_s10 = scalar_lea.hbm %s1643_s3, 4096 }
  0x37   :  { %p1409_p10 = scmp.ne.s32.totalorder %s1643_s3, %s1408_s10  ;;  %p1412_p11 = scmp.lt.u32.totalorder %s1408_s10, %s1643_s3 }
  0x39   :  { %p1414_p12 = pnand %p1412_p11, %p1409_p10 }
  0x3b   :  { %1417 = shalt.err (!%p1414_p12)
}
  0x3c   :  { %s1418_s15 = scalar_lea.vmem %s1529_s23, 4096  ;;  %p1423_p0 = scmp.lt.s32.totalorder %s1529_s23, %s1529_s23 }
  0x3d   :  { %p1419_p13 = scmp.ne.s32.totalorder %s1529_s23, %s1418_s15  ;;  %p1424_p1 = scmp.lt.s32.totalorder %s1418_s15, %s1418_s15 }
  0x3f   :  { %p1425_p2 = por %p1424_p1, %p1423_p0 }
  0x41   :  { %p1426_p3 = pnand %p1425_p2, %p1419_p13 }
  0x43   :  { %1429 = shalt.err (!%p1426_p3)
}
  0x44   :  { %59 = dma.hbm_to_vmem [thread:$0]  %s1643_s3, 4096, %s1529_s23, [#allocation9], %s1464_s1, %s1464_s1, %s1465_s17  }
  0x45   :  { %1452 = dma.done.wait [#allocation3], 128  }
  0x46   :  { %1453 = vsyncadd [#allocation3], 4294967168 }
  0x47   :  { %1454 = dma.done.wait [#allocation6], 8320  }
  0x48   :  { %1455 = vsyncadd [#allocation6], 4294958976 }
  0x49   :  { %1456 = dma.done.wait [#allocation9], 4096  }
  0x4a   :  { %1457 = vsyncadd [#allocation9], 4294963200  ;;  %v1468_v0 = vmov 0   ;;  %v77_v1 = vld [vmem:[#allocation5] sm:$0xff]  ;;  %v78_v3 = vld [vmem:[#allocation5 + $0x8] sm:$0xff]  ;;  %s1469_s17 = smov [#allocation10]  }
  0x4b   :  { %541 = vmatprep.mubr.bf16.mxu0 %v1468_v0  ;;  %584 = vmatprep.mubr.bf16.mxu1 %v1468_v0  ;;  %v81_v2 = vld [vmem:[#allocation5 + $0x20] sm:$0xff]  ;;  %v82_v5 = vld [vmem:[#allocation5 + $0x28] sm:$0xff]  ;;  %v79_v60 = vld [vmem:[#allocation5 + $0x10] sm:$0xff]  ;;  %s1101_s18 = sshll.u32 %s1469_s17, 4  ;;  %s1102_s18 = int_to_ptr.vmem [resolvable:$true] %s1101_s18 }
  0x4c   :  { %v1117_v4 = vcombine.high %v77_v1, %v81_v2  ;;  %v1116_v6 = vcombine.low %v77_v1, %v81_v2  ;;  %v85_v7 = vld [vmem:[#allocation5 + $0x40] sm:$0xff]  ;;  %v1119_v9 = vcombine.high %v78_v3, %v82_v5  ;;  %v1118_v10 = vcombine.low %v78_v3, %v82_v5  ;;  %v86_v12 = vld [vmem:[#allocation5 + $0x48] sm:$0xff]  ;;  %v83_v61 = vld [vmem:[#allocation5 + $0x30] sm:$0xff]  ;;  %p1435_p5 = scmp.lt.s32.totalorder %s1102_s18, %s1102_s18 }
  0x4d   :  { %v89_v8 = vld [vmem:[#allocation5 + $0x60] sm:$0xff]  ;;  %v90_v13 = vld [vmem:[#allocation5 + $0x68] sm:$0xff]  ;;  %v80_v1 = vld [vmem:[#allocation5 + $0x18] sm:$0xff] }
  0x4e   :  { %v1125_v11 = vcombine.high %v85_v7, %v89_v8  ;;  %v93_v14 = vld [vmem:[#allocation5 + $0x80] sm:$0xff]  ;;  %509 = vmatprep.subr.bf16.mxu0 %v1117_v4  ;;  %v1127_v15 = vcombine.high %v86_v12, %v90_v13  ;;  %v94_v17 = vld [vmem:[#allocation5 + $0x88] sm:$0xff]  ;;  %552 = vmatprep.subr.bf16.mxu1 %v1119_v9  ;;  %v1124_v19 = vcombine.low %v85_v7, %v89_v8  ;;  %v84_v2 = vld [vmem:[#allocation5 + $0x38] sm:$0xff] }
  0x4f   :  { %v97_v16 = vld [vmem:[#allocation5 + $0xa0] sm:$0xff]  ;;  %v98_v18 = vld [vmem:[#allocation5 + $0xa8] sm:$0xff]  ;;  %510 = vmatpush1.bf16.msra.mxu0 %v1116_v6  ;;  %553 = vmatpush1.bf16.msra.mxu1 %v1118_v10  ;;  %v1126_v20 = vcombine.low %v86_v12, %v90_v13  ;;  %v87_v5 = vld [vmem:[#allocation5 + $0x50] sm:$0xff]  ;;  %v1121_v9 = vcombine.high %v79_v60, %v83_v61  ;;  %v1123_v12 = vcombine.high %v80_v1, %v84_v2 }
  0x50   :  { %511 = vmatprep.subr.bf16.mxu0 %v1125_v11  ;;  %v1133_v21 = vcombine.high %v93_v14, %v97_v16  ;;  %554 = vmatprep.subr.bf16.mxu1 %v1127_v15  ;;  %v1135_v22 = vcombine.high %v94_v17, %v98_v18  ;;  %v101_v23 = vld [vmem:[#allocation5 + $0xc0] sm:$0xff]  ;;  %v102_v25 = vld [vmem:[#allocation5 + $0xc8] sm:$0xff]  ;;  %v1132_v27 = vcombine.low %v93_v14, %v97_v16  ;;  %v91_v6 = vld [vmem:[#allocation5 + $0x70] sm:$0xff] }
  0x51   :  { %v105_v24 = vld [vmem:[#allocation5 + $0xe0] sm:$0xff]  ;;  %v106_v26 = vld [vmem:[#allocation5 + $0xe8] sm:$0xff]  ;;  %v1134_v28 = vcombine.low %v94_v17, %v98_v18  ;;  %v1565_v8 = vld [vmem:[#allocation2] sm:$0xff]   ;;  %v1120_v13 = vcombine.low %v79_v60, %v83_v61  ;;  %v1122_v16 = vcombine.low %v80_v1, %v84_v2  ;;  %v1129_v17 = vcombine.high %v87_v5, %v91_v6 }
  0x52   :  { %v1141_v29 = vcombine.high %v101_v23, %v105_v24  ;;  %v1143_v30 = vcombine.high %v102_v25, %v106_v26  ;;  %v109_v31 = vld [vmem:[#allocation5 + $0x100] sm:$0xff]  ;;  %v110_v33 = vld [vmem:[#allocation5 + $0x108] sm:$0xff]  ;;  %v1140_v35 = vcombine.low %v101_v23, %v105_v24  ;;  %v1142_v36 = vcombine.low %v102_v25, %v106_v26  ;;  %v88_v10 = vld [vmem:[#allocation5 + $0x58] sm:$0xff] }
  0x53   :  { %512 = vmatpush1.bf16.msra.mxu0 %v1124_v19  ;;  %555 = vmatpush1.bf16.msra.mxu1 %v1126_v20  ;;  %v113_v32 = vld [vmem:[#allocation5 + $0x120] sm:$0xff]  ;;  %v114_v34 = vld [vmem:[#allocation5 + $0x128] sm:$0xff]  ;;  %v92_v11 = vld [vmem:[#allocation5 + $0x78] sm:$0xff] }
  0x54   :  { %513 = vmatprep.subr.bf16.mxu0 %v1133_v21  ;;  %556 = vmatprep.subr.bf16.mxu1 %v1135_v22  ;;  %v1149_v37 = vcombine.high %v109_v31, %v113_v32  ;;  %v1151_v38 = vcombine.high %v110_v33, %v114_v34  ;;  %v117_v39 = vld [vmem:[#allocation5 + $0x140] sm:$0xff]  ;;  %v118_v41 = vld [vmem:[#allocation5 + $0x148] sm:$0xff]  ;;  %v1148_v43 = vcombine.low %v109_v31, %v113_v32  ;;  %v95_v14 = vld [vmem:[#allocation5 + $0x90] sm:$0xff] }
  0x55   :  { %v121_v40 = vld [vmem:[#allocation5 + $0x160] sm:$0xff]  ;;  %v122_v42 = vld [vmem:[#allocation5 + $0x168] sm:$0xff]  ;;  %v1150_v44 = vcombine.low %v110_v33, %v114_v34  ;;  %v99_v15 = vld [vmem:[#allocation5 + $0xb0] sm:$0xff]  ;;  %v1131_v20 = vcombine.high %v88_v10, %v92_v11  ;;  %v1128_v21 = vcombine.low %v87_v5, %v91_v6  ;;  %v1130_v24 = vcombine.low %v88_v10, %v92_v11 }
  0x56   :  { %v1157_v45 = vcombine.high %v117_v39, %v121_v40  ;;  %v1159_v46 = vcombine.high %v118_v41, %v122_v42  ;;  %v125_v47 = vld [vmem:[#allocation5 + $0x180] sm:$0xff]  ;;  %v126_v49 = vld [vmem:[#allocation5 + $0x188] sm:$0xff]  ;;  %v1156_v51 = vcombine.low %v117_v39, %v121_v40  ;;  %v1158_v52 = vcombine.low %v118_v41, %v122_v42  ;;  %v96_v18 = vld [vmem:[#allocation5 + $0x98] sm:$0xff] }
  0x57   :  { %514 = vmatpush1.bf16.msra.mxu0 %v1132_v27  ;;  %557 = vmatpush1.bf16.msra.mxu1 %v1134_v28  ;;  %v129_v48 = vld [vmem:[#allocation5 + $0x1a0] sm:$0xff]  ;;  %v130_v50 = vld [vmem:[#allocation5 + $0x1a8] sm:$0xff]  ;;  %v100_v19 = vld [vmem:[#allocation5 + $0xb8] sm:$0xff]  ;;  %v1137_v25 = vcombine.high %v95_v14, %v99_v15 }
  0x58   :  { %515 = vmatprep.subr.bf16.mxu0 %v1141_v29  ;;  %558 = vmatprep.subr.bf16.mxu1 %v1143_v30  ;;  %v1165_v53 = vcombine.high %v125_v47, %v129_v48  ;;  %v133_v54 = vld [vmem:[#allocation5 + $0x1c0] sm:$0xff]  ;;  %v1167_v56 = vcombine.high %v126_v49, %v130_v50  ;;  %v134_v57 = vld [vmem:[#allocation5 + $0x1c8] sm:$0xff]  ;;  %v1164_v59 = vcombine.low %v125_v47, %v129_v48  ;;  %v103_v22 = vld [vmem:[#allocation5 + $0xd0] sm:$0xff] }
  0x59   :  { %v137_v55 = vld [vmem:[#allocation5 + $0x1e0] sm:$0xff]  ;;  %v138_v58 = vld [vmem:[#allocation5 + $0x1e8] sm:$0xff]  ;;  %v1166_v62 = vcombine.low %v126_v49, %v130_v50  ;;  %v107_v23 = vld [vmem:[#allocation5 + $0xf0] sm:$0xff]  ;;  %v1139_v28 = vcombine.high %v96_v18, %v100_v19  ;;  %v1136_v29 = vcombine.low %v95_v14, %v99_v15  ;;  %v1138_v32 = vcombine.low %v96_v18, %v100_v19 }
  0x5a   :  { %v1173_v63 = vcombine.high %v133_v54, %v137_v55  ;;  %v1175_v3 = vcombine.high %v134_v57, %v138_v58  ;;  %v1172_v4 = vcombine.low %v133_v54, %v137_v55  ;;  %v1174_v7 = vcombine.low %v134_v57, %v138_v58  ;;  %v104_v26 = vld [vmem:[#allocation5 + $0xd8] sm:$0xff]  ;;  %v111_v30 = vld [vmem:[#allocation5 + $0x110] sm:$0xff]  ;;  %v1280_v5 = vld [vmem:[#allocation8] sm:$0xff]  }
  0x5b   :  { %516 = vmatpush1.bf16.msra.mxu0 %v1140_v35  ;;  %559 = vmatpush1.bf16.msra.mxu1 %v1142_v36  ;;  %v108_v27 = vld [vmem:[#allocation5 + $0xf8] sm:$0xff]  ;;  %v115_v31 = vld [vmem:[#allocation5 + $0x130] sm:$0xff]  ;;  %v1145_v33 = vcombine.high %v103_v22, %v107_v23  ;;  %v1281_v6 = vld [vmem:[#allocation8 + $0x80] sm:$0xff]  }
  0x5c   :  { %517 = vmatprep.subr.bf16.mxu0 %v1149_v37  ;;  %560 = vmatprep.subr.bf16.mxu1 %v1151_v38  ;;  %v112_v34 = vld [vmem:[#allocation5 + $0x118] sm:$0xff]  ;;  %v1147_v36 = vcombine.high %v104_v26, %v108_v27  ;;  %v1144_v37 = vcombine.low %v103_v22, %v107_v23  ;;  %v1146_v38 = vcombine.low %v104_v26, %v108_v27  ;;  %v119_v40 = vld [vmem:[#allocation5 + $0x150] sm:$0xff]  ;;  %v1290_v15 = vld [vmem:[#allocation8 + $0x58] sm:$0xff]  }
  0x5d   :  { %v116_v35 = vld [vmem:[#allocation5 + $0x138] sm:$0xff]  ;;  %v1153_v39 = vcombine.high %v111_v30, %v115_v31  ;;  %v123_v41 = vld [vmem:[#allocation5 + $0x170] sm:$0xff]  ;;  %v1293_v18 = vld [vmem:[#allocation8 + $0x98] sm:$0xff]  }
  0x5e   :  { %v120_v42 = vld [vmem:[#allocation5 + $0x158] sm:$0xff]  ;;  %v127_v48 = vld [vmem:[#allocation5 + $0x190] sm:$0xff]  ;;  %v1294_v19 = vld [vmem:[#allocation8 + $0x60] sm:$0xff]  }
  0x5f   :  { %518 = vmatpush1.bf16.msra.mxu0 %v1148_v43  ;;  %561 = vmatpush1.bf16.msra.mxu1 %v1150_v44  ;;  %v124_v43 = vld [vmem:[#allocation5 + $0x178] sm:$0xff]  ;;  %v1152_v44 = vcombine.low %v111_v30, %v115_v31  ;;  %v131_v49 = vld [vmem:[#allocation5 + $0x1b0] sm:$0xff]  ;;  %v1297_v22 = vld [vmem:[#allocation8 + $0xa0] sm:$0xff]  }
  0x60   :  { %519 = vmatprep.subr.bf16.mxu0 %v1157_v45  ;;  %562 = vmatprep.subr.bf16.mxu1 %v1159_v46  ;;  %v1154_v45 = vcombine.low %v112_v34, %v116_v35  ;;  %v1161_v46 = vcombine.high %v119_v40, %v123_v41  ;;  %v1163_v47 = vcombine.high %v120_v42, %v124_v43  ;;  %v128_v50 = vld [vmem:[#allocation5 + $0x198] sm:$0xff]  ;;  %v139_v57 = vld [vmem:[#allocation5 + $0x1f0] sm:$0xff]  ;;  %v1306_v31 = vld [vmem:[#allocation8 + $0x78] sm:$0xff]  }
  0x61   :  { %v1169_v54 = vcombine.high %v127_v48, %v131_v49  ;;  %v136_v58 = vld [vmem:[#allocation5 + $0x1d8] sm:$0xff]  ;;  %v1168_v60 = vcombine.low %v127_v48, %v131_v49  ;;  %v1284_v10 = vld [vmem:[#allocation8 + $0x8] sm:$0xff]  }
  0x62   :  { %v1285_v11 = vld [vmem:[#allocation8 + $0x88] sm:$0xff]   ;;  %v1288_v14 = vld [vmem:[#allocation8 + $0x10] sm:$0xff]  }
  0x63   :  { %520 = vmatpush1.bf16.msra.mxu0 %v1156_v51  ;;  %563 = vmatpush1.bf16.msra.mxu1 %v1158_v52  ;;  %v132_v51 = vld [vmem:[#allocation5 + $0x1b8] sm:$0xff]  ;;  %v1160_v52 = vcombine.low %v119_v40, %v123_v41  ;;  %v1298_v23 = vld [vmem:[#allocation8 + $0x68] sm:$0xff]  }
  0x64   :  { %521 = vmatprep.subr.bf16.mxu0 %v1165_v53  ;;  %564 = vmatprep.subr.bf16.mxu1 %v1167_v56  ;;  %v1162_v53 = vcombine.low %v120_v42, %v124_v43  ;;  %v1171_v55 = vcombine.high %v128_v50, %v132_v51  ;;  %v135_v56 = vld [vmem:[#allocation5 + $0x1d0] sm:$0xff]  ;;  %v1170_v61 = vcombine.low %v128_v50, %v132_v51  ;;  %v1302_v27 = vld [vmem:[#allocation8 + $0x70] sm:$0xff]  }
  0x65   :  { %v1176_v1 = vcombine.low %v135_v56, %v139_v57  ;;  %v1301_v26 = vld [vmem:[#allocation8 + $0xa8] sm:$0xff]   ;;  %v1305_v30 = vld [vmem:[#allocation8 + $0xb0] sm:$0xff]  }
  0x67   :  { %522 = vmatpush1.bf16.msra.mxu0 %v1164_v59  ;;  %565 = vmatpush1.bf16.msra.mxu1 %v1166_v62  ;;  %v140_v59 = vld [vmem:[#allocation5 + $0x1f8] sm:$0xff]  ;;  %v1177_v62 = vcombine.high %v135_v56, %v139_v57 }
  0x68   :  { %523 = vmatprep.subr.bf16.mxu0 %v1173_v63  ;;  %566 = vmatprep.subr.bf16.mxu1 %v1175_v3  ;;  %v1179_v63 = vcombine.high %v136_v58, %v140_v59  ;;  %v1178_v2 = vcombine.low %v136_v58, %v140_v59  ;;  %v1278_v3 = vld [vmem:[#allocation8 + $0x40] sm:$0xff]  }
  0x6b   :  { %524 = vmatpush1.bf16.msra.mxu0 %v1172_v4  ;;  %567 = vmatpush1.bf16.msra.mxu1 %v1174_v7  ;;  %v1279_v4 = vld [vmem:[#allocation8 + $0xc0] sm:$0xff]   ;;  %v1282_v7 = vld [vmem:[#allocation8 + $0x48] sm:$0xff]  }
  0x6c   :  { %595 = vmatprep.subr.bf16.mxu0 %v1121_v9  ;;  %638 = vmatprep.subr.bf16.mxu1 %v1123_v12  ;;  %v1283_v9 = vld [vmem:[#allocation8 + $0xc8] sm:$0xff]   ;;  %v1286_v12 = vld [vmem:[#allocation8 + $0x50] sm:$0xff]  }
  0x6e   :  { %542 = vmatmul.mubr.bf16.vlgmr.msra.gmra.mrb[0].mxu0 %v1565_v8  ;;  %585 = vmatmul.mubr.bf16.vlgmr.msra.gmra.mrb[0].mxu1 %v1565_v8 }
  0x6f   :  { %596 = vmatpush1.bf16.msra.mxu0 %v1120_v13  ;;  %639 = vmatpush1.bf16.msra.mxu1 %v1122_v16  ;;  %v1287_v13 = vld [vmem:[#allocation8 + $0xd0] sm:$0xff]   ;;  %v1291_v16 = vld [vmem:[#allocation8 + $0xd8] sm:$0xff]  }
  0x70   :  { %597 = vmatprep.subr.bf16.mxu0 %v1129_v17  ;;  %640 = vmatprep.subr.bf16.mxu1 %v1131_v20  ;;  %v1292_v17 = vld [vmem:[#allocation8 + $0x18] sm:$0xff]   ;;  %v1295_v20 = vld [vmem:[#allocation8 + $0xe0] sm:$0xff]  }
  0x71   :  { %627 = vmatprep.mubr.bf16.mxu0 %v1468_v0  ;;  %670 = vmatprep.mubr.bf16.mxu1 %v1468_v0  ;;  %v1155_v0 = vcombine.high %v112_v34, %v116_v35  ;;  %v1309_v34 = vld [vmem:[#allocation8 + $0xb8] sm:$0xff]   ;;  %v143_v35 = vlaneseq }
  0x73   :  { %598 = vmatpush1.bf16.msra.mxu0 %v1128_v21  ;;  %641 = vmatpush1.bf16.msra.mxu1 %v1130_v24  ;;  %v1296_v21 = vld [vmem:[#allocation8 + $0x20] sm:$0xff]   ;;  %v1299_v24 = vld [vmem:[#allocation8 + $0xe8] sm:$0xff]  }
  0x74   :  { %599 = vmatprep.subr.bf16.mxu0 %v1137_v25  ;;  %642 = vmatprep.subr.bf16.mxu1 %v1139_v28  ;;  %v1300_v25 = vld [vmem:[#allocation8 + $0x28] sm:$0xff]   ;;  %v1303_v28 = vld [vmem:[#allocation8 + $0xf0] sm:$0xff]  }
  0x77   :  { %600 = vmatpush1.bf16.msra.mxu0 %v1136_v29  ;;  %643 = vmatpush1.bf16.msra.mxu1 %v1138_v32  ;;  %v1304_v29 = vld [vmem:[#allocation8 + $0x30] sm:$0xff]   ;;  %v1307_v32 = vld [vmem:[#allocation8 + $0xf8] sm:$0xff]  }
  0x78   :  { %601 = vmatprep.subr.bf16.mxu0 %v1145_v33  ;;  %644 = vmatprep.subr.bf16.mxu1 %v1147_v36  ;;  %v1308_v33 = vld [vmem:[#allocation8 + $0x38] sm:$0xff]   ;;  %v1573_v36 = vshrl.u32 %v143_v35, 7 }
  0x7a   :  { %v157_v40 = vsub.s32 3, %v1573_v36 }
  0x7b   :  { %602 = vmatpush1.bf16.msra.mxu0 %v1144_v37  ;;  %645 = vmatpush1.bf16.msra.mxu1 %v1146_v38  ;;  %v145_v37 = vsub.s32 0, %v1573_v36  ;;  %v1576_v38 = vld [vmem:[#allocation7] sm:$0xff] }
  0x7c   :  { %603 = vmatprep.subr.bf16.mxu0 %v1153_v39  ;;  %646 = vmatprep.subr.bf16.mxu1 %v1155_v0  ;;  %v153_v39 = vsub.s32 2, %v1573_v36  ;;  %v149_v0 = vsub.s32 1, %v1573_v36 }
  0x7d   :  { %v146_v41 = vrot.slane %v1576_v38, %v145_v37 }
  0x7e   :  { %v154_v42 = vrot.slane %v1576_v38, %v153_v39  ;;  %v150_v43 = vrot.slane %v1576_v38, %v149_v0 }
  0x7f   :  { %604 = vmatpush1.bf16.msra.mxu0 %v1152_v44  ;;  %647 = vmatpush1.bf16.msra.mxu1 %v1154_v45  ;;  %v158_v44 = vrot.slane %v1576_v38, %v157_v40 }
  0x80   :  { %605 = vmatprep.subr.bf16.mxu0 %v1161_v46  ;;  %648 = vmatprep.subr.bf16.mxu1 %v1163_v47 }
  0x83   :  { %606 = vmatpush1.bf16.msra.mxu0 %v1160_v52  ;;  %649 = vmatpush1.bf16.msra.mxu1 %v1162_v53 }
  0x84   :  { %607 = vmatprep.subr.bf16.mxu0 %v1169_v54  ;;  %650 = vmatprep.subr.bf16.mxu1 %v1171_v55 }
  0x87   :  { %608 = vmatpush1.bf16.msra.mxu0 %v1168_v60  ;;  %651 = vmatpush1.bf16.msra.mxu1 %v1170_v61 }
  0x88   :  { %609 = vmatprep.subr.bf16.mxu0 %v1177_v62  ;;  %652 = vmatprep.subr.bf16.mxu1 %v1179_v63 }
  0x8b   :  { %610 = vmatpush1.bf16.msra.mxu0 %v1176_v1  ;;  %653 = vmatpush1.bf16.msra.mxu1 %v1178_v2 }
  0x8c   :  { %1221 = vmatprep.subr.bf16.mxu0 %v1278_v3  ;;  %1243 = vmatprep.subr.bf16.mxu1 %v1279_v4 }
  0x8e   :  { %628 = vmatmul.mubr.bf16.vlgmr.msra.gmra.mrb[4].mxu0 %v1565_v8  ;;  %671 = vmatmul.mubr.bf16.vlgmr.msra.gmra.mrb[4].mxu1 %v1565_v8  ;;  %v1289_v8 = vld [vmem:[#allocation8 + $0x90] sm:$0xff]  }
  0x8f   :  { %1222 = vmatpush3.bf16.msra.mxu0 %v1280_v5  ;;  %1244 = vmatpush3.bf16.msra.mxu1 %v1281_v6 }
  0x90   :  { %1223 = vmatprep.subr.bf16.mxu0 %v1282_v7  ;;  %1245 = vmatprep.subr.bf16.mxu1 %v1283_v9 }
  0x93   :  { %1224 = vmatpush3.bf16.msra.mxu0 %v1284_v10  ;;  %1246 = vmatpush3.bf16.msra.mxu1 %v1285_v11 }
  0x94   :  { %1225 = vmatprep.subr.bf16.mxu0 %v1286_v12  ;;  %1247 = vmatprep.subr.bf16.mxu1 %v1287_v13 }
  0x97   :  { %1226 = vmatpush3.bf16.msra.mxu0 %v1288_v14  ;;  %1248 = vmatpush3.bf16.msra.mxu1 %v1289_v8 }
  0x98   :  { %1227 = vmatprep.subr.bf16.mxu0 %v1290_v15  ;;  %1249 = vmatprep.subr.bf16.mxu1 %v1291_v16 }
  0x9b   :  { %1228 = vmatpush3.bf16.msra.mxu0 %v1292_v17  ;;  %1250 = vmatpush3.bf16.msra.mxu1 %v1293_v18 }
  0x9c   :  { %1229 = vmatprep.subr.bf16.mxu0 %v1294_v19  ;;  %1251 = vmatprep.subr.bf16.mxu1 %v1295_v20 }
  0x9f   :  { %1230 = vmatpush3.bf16.msra.mxu0 %v1296_v21  ;;  %1252 = vmatpush3.bf16.msra.mxu1 %v1297_v22  ;;  %v161_v22 = vsub.s32 4, %v1573_v36 }
  0xa0   :  { %1231 = vmatprep.subr.bf16.mxu0 %v1298_v23  ;;  %1253 = vmatprep.subr.bf16.mxu1 %v1299_v24  ;;  %v169_v23 = vsub.s32 6, %v1573_v36  ;;  %v165_v24 = vsub.s32 5, %v1573_v36 }
  0xa3   :  { %1232 = vmatpush3.bf16.msra.mxu0 %v1300_v25  ;;  %1254 = vmatpush3.bf16.msra.mxu1 %v1301_v26  ;;  %v173_v25 = vsub.s32 7, %v1573_v36 }
  0xa4   :  { %1233 = vmatprep.subr.bf16.mxu0 %v1302_v27  ;;  %1255 = vmatprep.subr.bf16.mxu1 %v1303_v28  ;;  %v162_v28 = vrot.slane %v1576_v38, %v161_v22 }
  0xa7   :  { %1234 = vmatpush3.bf16.msra.mxu0 %v1304_v29  ;;  %1256 = vmatpush3.bf16.msra.mxu1 %v1305_v30  ;;  %v170_v30 = vrot.slane %v1576_v38, %v169_v23 }
  0xa8   :  { %1235 = vmatprep.subr.bf16.mxu0 %v1306_v31  ;;  %1257 = vmatprep.subr.bf16.mxu1 %v1307_v32  ;;  %v166_v31 = vrot.slane %v1576_v38, %v165_v24 }
  0xab   :  { %1236 = vmatpush3.bf16.msra.mxu0 %v1308_v33  ;;  %1258 = vmatpush3.bf16.msra.mxu1 %v1309_v34  ;;  %v174_v33 = vrot.slane %v1576_v38, %v173_v25 }
 0x141   :  { %v543_v45 = vpop.f32.mrb[0].mxu0  ;;  %v586_v47 = vpop.f32.mrb[0].mxu1 }
 0x142   :  { %v1585_v46 = vadd.f32 %v543_v45, %v146_v41  ;;  %v545_v48 = vpop.f32.mrb[1].mxu0  ;;  %v1587_v49 = vadd.f32 %v586_v47, %v154_v42  ;;  %v588_v51 = vpop.f32.mrb[1].mxu1 }
 0x143   :  { %v1589_v50 = vadd.f32 %v545_v48, %v150_v43  ;;  %v547_v52 = vpop.f32.mrb[2].mxu0  ;;  %v1592_v54 = vadd.f32 %v588_v51, %v158_v44  ;;  %v590_v56 = vpop.f32.mrb[2].mxu1 }
 0x144   :  { %v1180_v53 = vmul.f32 -1.442695, %v1585_v46  ;;  %v1594_v55 = vadd.f32 %v547_v52, %v146_v41  ;;  %v549_v57 = vpop.f32.mrb[3].mxu0  ;;  %v1182_v58 = vmul.f32 -1.442695, %v1587_v49  ;;  %v1598_v60 = vadd.f32 %v590_v56, %v154_v42  ;;  %v592_v62 = vpop.f32.mrb[3].mxu1 }
 0x145   :  { %v1181_v59 = vmul.f32 -1.442695, %v1589_v50  ;;  %v1600_v61 = vadd.f32 %v549_v57, %v150_v43  ;;  %v1183_v63 = vmul.f32 -1.442695, %v1592_v54  ;;  %v1604_v2 = vadd.f32 %v592_v62, %v158_v44 }
 0x146   :  { %1310 = vpow2.f32 %v1180_v53  ;;  %v1184_v1 = vmul.f32 -1.442695, %v1594_v55  ;;  %v1186_v3 = vmul.f32 -1.442695, %v1598_v60 }
 0x147   :  { %1312 = vpow2.f32 %v1182_v58  ;;  %v1185_v4 = vmul.f32 -1.442695, %v1600_v61  ;;  %v1187_v5 = vmul.f32 -1.442695, %v1604_v2 }
 0x148   :  { %1314 = vpow2.f32 %v1181_v59 }
 0x149   :  { %1316 = vpow2.f32 %v1183_v63 }
 0x14a   :  { %1318 = vpow2.f32 %v1184_v1 }
 0x14b   :  { %1320 = vpow2.f32 %v1186_v3 }
 0x14c   :  { %1322 = vpow2.f32 %v1185_v4 }
 0x14d   :  { %1324 = vpow2.f32 %v1187_v5 }
 0x150   :  { %v1311_v6 = vpop.eup %1310 }
 0x151   :  { %v1313_v7 = vpop.eup %1312  ;;  %v705_v9 = vadd.f32 1.0, %v1311_v6 }
 0x152   :  { %v1315_v10 = vpop.eup %1314  ;;  %v707_v11 = vadd.f32 1.0, %v1313_v7 }
 0x153   :  { %v1317_v12 = vpop.eup %1316  ;;  %1326 = vrcp.f32 %v705_v9  ;;  %v706_v13 = vadd.f32 1.0, %v1315_v10 }
 0x154   :  { %v1319_v14 = vpop.eup %1318  ;;  %1328 = vrcp.f32 %v707_v11  ;;  %v708_v8 = vadd.f32 1.0, %v1317_v12 }
 0x155   :  { %v1321_v15 = vpop.eup %1320  ;;  %1330 = vrcp.f32 %v706_v13  ;;  %v709_v16 = vadd.f32 1.0, %v1319_v14  ;;  %v1188_v13 = vld [vmem:[%s1644_s4] ss:$0 sm:$0xff]  ;;  %s1430_s4 = scalar_lea.vmem %s1102_s18, 256 }
 0x156   :  { %v1323_v17 = vpop.eup %1322  ;;  %1332 = vrcp.f32 %v708_v8  ;;  %v711_v18 = vadd.f32 1.0, %v1321_v15  ;;  %p1431_p4 = scmp.ne.s32.totalorder %s1102_s18, %s1430_s4  ;;  %p1436_p6 = scmp.lt.s32.totalorder %s1430_s4, %s1430_s4 }
 0x157   :  { %v1325_v19 = vpop.eup %1324  ;;  %1334 = vrcp.f32 %v709_v16  ;;  %v710_v20 = vadd.f32 1.0, %v1323_v17 }
 0x158   :  { %1336 = vrcp.f32 %v711_v18  ;;  %v712_v21 = vadd.f32 1.0, %v1325_v19  ;;  %p1437_p7 = por %p1436_p6, %p1435_p5 }
 0x159   :  { %1338 = vrcp.f32 %v710_v20 }
 0x15a   :  { %1340 = vrcp.f32 %v712_v21  ;;  %p1438_p8 = pnand %p1437_p7, %p1431_p4 }
 0x15d   :  { %v1327_v26 = vpop.eup %1326 }
 0x15e   :  { %v1329_v27 = vpop.eup %1328  ;;  %v729_v35 = vmul.f32 %v1327_v26, %v1585_v46 }
 0x15f   :  { %v1331_v29 = vpop.eup %1330  ;;  %v731_v0 = vmul.f32 %v1329_v27, %v1587_v49 }
 0x160   :  { %v1333_v32 = vpop.eup %1332  ;;  %v730_v36 = vmul.f32 %v1331_v29, %v1589_v50 }
 0x161   :  { %v1335_v34 = vpop.eup %1334  ;;  %v629_v37 = vpop.f32.mrb[4].mxu0  ;;  %v732_v40 = vmul.f32 %v1333_v32, %v1592_v54 }
 0x162   :  { %v1337_v39 = vpop.eup %1336  ;;  %v630_v41 = vadd.f32 %v629_v37, %v162_v28  ;;  %v672_v42 = vpop.f32.mrb[4].mxu1  ;;  %v733_v45 = vmul.f32 %v1335_v34, %v1594_v55 }
 0x163   :  { %v631_v43 = vpop.f32.mrb[5].mxu0  ;;  %v1339_v44 = vpop.eup %1338  ;;  %v735_v47 = vmul.f32 %v1337_v39, %v1598_v60  ;;  %v673_v38 = vadd.f32 %v672_v42, %v170_v30 }
 0x164   :  { %v632_v48 = vadd.f32 %v631_v43, %v166_v31  ;;  %v674_v51 = vpop.f32.mrb[5].mxu1  ;;  %v633_v46 = vpop.f32.mrb[6].mxu0  ;;  %v734_v53 = vmul.f32 %v1339_v44, %v1600_v61  ;;  %v737_v49 = vmul.f32 %v729_v35, %v630_v41 }
 0x165   :  { %v1341_v52 = vpop.eup %1340  ;;  %v675_v56 = vadd.f32 %v674_v51, %v174_v33  ;;  %v634_v50 = vadd.f32 %v633_v46, %v162_v28  ;;  %v676_v57 = vpop.f32.mrb[6].mxu1  ;;  %v739_v59 = vmul.f32 %v731_v0, %v673_v38 }
 0x166   :  { %v635_v54 = vpop.f32.mrb[7].mxu0  ;;  %v736_v58 = vmul.f32 %v1341_v52, %v1604_v2  ;;  %v738_v62 = vmul.f32 %v730_v36, %v632_v48  ;;  %v677_v63 = vadd.f32 %v676_v57, %v170_v30  ;;  %v678_v55 = vpop.f32.mrb[7].mxu1 }
 0x167   :  { %v740_v1 = vmul.f32 %v732_v40, %v675_v56  ;;  %v741_v60 = vmul.f32 %v733_v45, %v634_v50  ;;  %v636_v3 = vadd.f32 %v635_v54, %v166_v31  ;;  %v679_v4 = vadd.f32 %v678_v55, %v174_v33 }
 0x168   :  { %v743_v5 = vmul.f32 %v735_v47, %v677_v63 }
 0x169   :  { %v745_v6 = vpack.c.bf16 %v741_v60, %v737_v49  ;;  %v742_v7 = vmul.f32 %v734_v53, %v636_v3  ;;  %v744_v9 = vmul.f32 %v736_v58, %v679_v4 }
 0x16a   :  { %v747_v61 = vpack.c.bf16 %v743_v5, %v739_v59 }
 0x16b   :  { %v746_v10 = vpack.c.bf16 %v742_v7, %v738_v62  ;;  %v748_v11 = vpack.c.bf16 %v744_v9, %v740_v1 }
 0x16d   :  { %1044 = vmatprep.mubr.bf16.mxu0 %v746_v10  ;;  %1085 = vmatprep.mubr.bf16.mxu1 %v748_v11 }
 0x16e   :  { %1045 = vmatmul.mubr.bf16.vlgmr.msra.gmra.mrb[8].mxu0 %v745_v6  ;;  %1086 = vmatmul.mubr.bf16.vlgmr.msra.gmra.mrb[8].mxu1 %v747_v61 }
 0x241   :  { %v1237_v2 = vpop.f32.mrb[8].mxu0  ;;  %v1259_v12 = vpop.f32.mrb[8].mxu1 }
 0x242   :  { %v1238_v14 = vpop.f32.mrb[9].mxu0  ;;  %v1260_v8 = vpop.f32.mrb[9].mxu1 }
 0x243   :  { %v1239_v15 = vadd.f32 %v1238_v14, %v1237_v2  ;;  %v1261_v16 = vadd.f32 %v1260_v8, %v1259_v12  ;;  %v1240_v17 = vpop.f32.mrb[10].mxu0  ;;  %v1262_v18 = vpop.f32.mrb[10].mxu1 }
 0x244   :  { %v1241_v19 = vpop.f32.mrb[11].mxu0  ;;  %v1263_v20 = vpop.f32.mrb[11].mxu1 }
 0x245   :  { %v1047_v21 = vadd.f32 %v1239_v15, %v1188_v13  ;;  %v1242_v22 = vadd.f32 %v1241_v19, %v1240_v17  ;;  %v1264_v23 = vadd.f32 %v1263_v20, %v1262_v18 }
 0x247   :  { %v1088_v24 = vadd.f32 %v1261_v16, %v1047_v21  ;;  %v1050_v25 = vadd.f32 %v1242_v22, %v1188_v13 }
 0x249   :  { %1094 = vst [vmem:[#allocation10] sm:$0xff] %v1088_v24  ;;  %v1091_v26 = vadd.f32 %v1264_v23, %v1050_v25 }
 0x24b   :  { %1095 = vst [vmem:[#allocation10 + $0x8] sm:$0xff] %v1091_v26 }
 0x24c   :  { %1441 = shalt.err (!%p1438_p8)
}
 0x24d   :  { %s1442_s21 = scalar_lea.hbm %s1645_s5, 256 }
 0x24e   :  { %p1443_p9 = scmp.ne.s32.totalorder %s1645_s5, %s1442_s21  ;;  %p1446_p10 = scmp.lt.u32.totalorder %s1442_s21, %s1645_s5 }
 0x250   :  { %p1448_p11 = pnand %p1446_p10, %p1443_p9 }
 0x252   :  { %1451 = shalt.err (!%p1448_p11)
}
 0x253   :  { %s1470_s26 = smov 128   ;;  %s1471_s27 = smov 8  }
 0x254   :  { %1107 = dma.vmem_to_hbm [thread:$0]  %s1102_s18, 256, %s1645_s5, [#allocation4], %s1470_s26, %s1470_s26, %s1471_s27  }
 0x255   :  { %1458 = dma.done.wait [#allocation4], 256  }
 0x256   :  { %1459 = vsyncadd [#allocation4], 4294967040 }
 0x257   :  { %1111 = vsyncpa [#allocation3], 1 }
 0x258   :  { %1112 = vsyncpa [#allocation6], 1 }
 0x259   :  { %1113 = vsyncpa [#allocation9], 1 }
 0x25a   :  { %1114 = vsyncpa [#allocation4], 1 }

</bundles_post_ra>
